<compile_context>
chip_gen: v7x
topology: tpu7x:2x2x1
jax: 0.10.0
libtpu: 0.0.40
codegen_flags: <defaults>
</compile_context>

<pallas_src>
import functools

import jax
import jax.numpy as jnp
from jax.experimental import pallas as pl
from jax.experimental.pallas import tpu as pltpu


# Pad the *weight* lane axis to one full lane group so the MXU operand is
# lane-aligned; the padded columns are zeros and are never stored.
LANE_PAD = 128


def _make_head_kernel(out_dim):
    def kernel(x_ref, w_ref, b_ref, o_ref):
        # Whole arrays resident in VMEM; single MXU matmul, f32 accumulate,
        # f32 bias add.  Only the real `out_dim` columns are stored (one
        # masked vst for a single-vreg output -- cheaper than dispatching a
        # separate slice op after the kernel).
        acc = jnp.dot(x_ref[...], w_ref[...], preferred_element_type=jnp.float32)
        acc = acc + b_ref[...]
        o_ref[...] = acc[:, :out_dim].astype(o_ref.dtype)

    return kernel


def prepare_trans_predictor_params(weight, bias, lane_pad=LANE_PAD):
    """One-time parameter setup (hoisted out of the per-call path).

    weight: [out_dim, nz] (PyTorch nn.Linear convention), bias: [out_dim].
    Returns (w_pad [nz, lane_pad], b_pad [1, lane_pad], out_dim).
    """
    out_dim, nz = weight.shape
    w_pad = jnp.zeros((nz, lane_pad), weight.dtype).at[:, :out_dim].set(weight.T)
    b_pad = jnp.zeros((1, lane_pad), bias.dtype).at[0, :out_dim].set(bias)
    return w_pad, b_pad, out_dim


def trans_predictor(feat, w_pad, b_pad, out_dim):
    """feat: [B, nz]; w_pad/b_pad from prepare_trans_predictor_params."""
    B, nz = feat.shape
    lane_pad = w_pad.shape[1]

    # Advisory hint: tell XLA this custom call is near-free.
    cost = pl.CostEstimate(
        flops=2 * B * nz * lane_pad,
        transcendentals=0,
        bytes_accessed=(B * nz + nz * lane_pad + lane_pad + B * out_dim) * 4,
    )

    return pl.pallas_call(
        _make_head_kernel(out_dim),
        out_shape=jax.ShapeDtypeStruct((B, out_dim), feat.dtype),
        # No grid: whole-array VMEM residency, no pipelining machinery.
        in_specs=[
            pl.BlockSpec(memory_space=pltpu.MemorySpace.VMEM),
            pl.BlockSpec(memory_space=pltpu.MemorySpace.VMEM),
            pl.BlockSpec(memory_space=pltpu.MemorySpace.VMEM),
        ],
        out_specs=pl.BlockSpec(memory_space=pltpu.MemorySpace.VMEM),
        cost_estimate=cost,
    )(feat, w_pad, b_pad)


if __name__ == "__main__":
    # Deterministic synthetic parameters matching nn.Linear(nz, 2) (orth=True).
    key = jax.random.PRNGKey(0)
    k_feat, k_w, k_b = jax.random.split(key, 3)

    B, nz, out_dim = 8, 32, 2  # orth=True -> 2 outputs [tx, ty]

    feat = jax.random.normal(k_feat, (B, nz), dtype=jnp.float32)
    # PyTorch nn.Linear weight shape: [out_features, in_features]
    bound = 1.0 / jnp.sqrt(nz)
    weight = jax.random.uniform(k_w, (out_dim, nz), jnp.float32, -bound, bound)
    bias = jax.random.uniform(k_b, (out_dim,), jnp.float32, -bound, bound)

    # One-time setup (transpose + pad done here, NOT per call).
    w_pad, b_pad, od = prepare_trans_predictor_params(weight, bias)

    # Run the whole head under jit: one dispatched custom call, no post-slice.
    trans_fn = jax.jit(functools.partial(trans_predictor, out_dim=od))
    trans = trans_fn(feat, w_pad, b_pad)
    trans = jax.block_until_ready(trans)

    # Pure-JAX reference check of the forward semantics.
    ref = feat @ weight.T + bias
    assert trans.shape == (B, out_dim)
    assert jnp.allclose(trans, ref, atol=1e-5, rtol=1e-5), "mismatch vs reference"

    print("KERNEL_OK")
</pallas_src>

<mosaic_0001>
module attributes {stable_mosaic.version = 11 : i64} {
  func.func @kernel(%arg0: memref<8x32xf32, #tpu.memory_space<vmem>>, %arg1: memref<32x128xf32, #tpu.memory_space<vmem>>, %arg2: memref<1x128xf32, #tpu.memory_space<vmem>>, %arg3: memref<8x2xf32, #tpu.memory_space<vmem>>) attributes {dimension_semantics = [], scalar_prefetch = 0 : i64, scratch_operands = 0 : i64, tpu.core_type = #tpu.core_type<tc>} {
    %c0 = arith.constant 0 : index
    %c0_0 = arith.constant 0 : index
    %0 = vector.load %arg0[%c0, %c0_0] : memref<8x32xf32, #tpu.memory_space<vmem>>, vector<8x32xf32>
    %c0_1 = arith.constant 0 : index
    %c0_2 = arith.constant 0 : index
    %1 = vector.load %arg1[%c0_1, %c0_2] : memref<32x128xf32, #tpu.memory_space<vmem>>, vector<32x128xf32>
    %cst = arith.constant dense<0.000000e+00> : vector<8x128xf32>
    %2 = tpu.matmul %0, %1, %cst {dimension_numbers = #tpu.dot_dimension_numbers<[1], [0], [0], [1], [0, 0, 1, 1], [], []>} : vector<8x32xf32>, vector<32x128xf32>, vector<8x128xf32> -> vector<8x128xf32>
    %c0_3 = arith.constant 0 : index
    %c0_4 = arith.constant 0 : index
    %3 = vector.load %arg2[%c0_3, %c0_4] : memref<1x128xf32, #tpu.memory_space<vmem>>, vector<1x128xf32>
    %4 = vector.broadcast %3 : vector<1x128xf32> to vector<8x128xf32>
    %5 = arith.addf %2, %4 : vector<8x128xf32>
    %6 = vector.extract_strided_slice %5 {offsets = [0, 0], sizes = [8, 2], strides = [1, 1]} : vector<8x128xf32> to vector<8x2xf32>
    %c0_5 = arith.constant 0 : index
    %c0_6 = arith.constant 0 : index
    %7 = vector.load %arg3[%c0_5, %c0_6] : memref<8x2xf32, #tpu.memory_space<vmem>>, vector<8x2xf32>
    tpu.vector_store %arg3[%c0_5, %c0_6], %6 {strides = array<i32>} : memref<8x2xf32, #tpu.memory_space<vmem>>, vector<8x2xf32>,
    return
  }
}

</mosaic_0001>

<bundles_post_ra>
// kernel: trans_predictor.1
= control target key start
LH: loop header
LB: loop body
LE: loop exit
PB: predicated region body
PF: predicated region fallthrough
CT: control target
= control target key end

     0   :  { %8 = vsyncpa [#allocation3], 0  ;;  %s277_s0 = inlined_call_operand.hbm [shape: f32[8,32], index: 0, kind: input, shape index: {}]   ;;  %s278_s1 = inlined_call_operand.hbm [shape: f32[32,128], index: 1, kind: input, shape index: {}]   ;;  %s279_s2 = inlined_call_operand.vmem [shape: f32[1,128], index: 2, kind: input, shape index: {}]   ;;  %s280_s3 = inlined_call_operand.vmem [shape: f32[8,2], index: 3, kind: output, shape index: {}]  }
   0x1   :  { %9 = vsyncpa [#allocation5], 0  ;;  %s213_s12 = smov [#allocation2]   ;;  %s214_s14 = smov [#allocation4]  }
   0x2   :  { %s16_s13 = sshll.u32 %s213_s12, 4  ;;  %s25_s15 = sshll.u32 %s214_s14, 4  ;;  %s17_s13 = int_to_ptr.vmem [resolvable:$true] %s16_s13  ;;  %s240_s15 = int_to_ptr.vmem [resolvable:$true] %s25_s15 }
   0x3   :  { %s165_s18 = scalar_lea.hbm %s277_s0, 128 }
   0x4   :  { %p166_p0 = scmp.ne.s32.totalorder %s277_s0, %s165_s18  ;;  %p169_p1 = scmp.lt.u32.totalorder %s165_s18, %s277_s0 }
   0x6   :  { %p171_p2 = pnand %p169_p1, %p166_p0 }
   0x8   :  { %174 = shalt.err (!%p171_p2)
}
   0x9   :  { %s175_s23 = scalar_lea.vmem %s17_s13, 128  ;;  %p180_p4 = scmp.lt.s32.totalorder %s17_s13, %s17_s13 }
   0xa   :  { %p176_p3 = scmp.ne.s32.totalorder %s17_s13, %s175_s23  ;;  %p181_p5 = scmp.lt.s32.totalorder %s175_s23, %s175_s23 }
   0xc   :  { %p182_p6 = por %p181_p5, %p180_p4 }
   0xe   :  { %p183_p7 = pnand %p182_p6, %p176_p3 }
  0x10   :  { %186 = shalt.err (!%p183_p7)
}
  0x11   :  { %19 = dma.hbm_to_vmem [thread:$0]  %s277_s0, 128, %s17_s13, [#allocation3]  }
  0x12   :  { %s187_s28 = scalar_lea.hbm %s278_s1, 512 }
  0x13   :  { %p188_p8 = scmp.ne.s32.totalorder %s278_s1, %s187_s28  ;;  %p191_p9 = scmp.lt.u32.totalorder %s187_s28, %s278_s1 }
  0x15   :  { %p193_p10 = pnand %p191_p9, %p188_p8 }
  0x17   :  { %196 = shalt.err (!%p193_p10)
}
  0x18   :  { %s197_s6 = scalar_lea.vmem %s240_s15, 512  ;;  %p202_p12 = scmp.lt.s32.totalorder %s240_s15, %s240_s15 }
  0x19   :  { %p198_p11 = scmp.ne.s32.totalorder %s240_s15, %s197_s6  ;;  %p203_p13 = scmp.lt.s32.totalorder %s197_s6, %s197_s6 }
  0x1b   :  { %p204_p0 = por %p203_p13, %p202_p12 }
  0x1d   :  { %p205_p1 = pnand %p204_p0, %p198_p11 }
  0x1f   :  { %208 = shalt.err (!%p205_p1)
}
  0x20   :  { %s215_s0 = smov 128   ;;  %s216_s7 = smov 8  }
  0x21   :  { %31 = dma.hbm_to_vmem [thread:$0]  %s278_s1, 512, %s240_s15, [#allocation5], %s215_s0, %s215_s0, %s216_s7  }
  0x22   :  { %209 = dma.done.wait [#allocation3], 128  }
  0x23   :  { %210 = vsyncadd [#allocation3], 4294967168 }
  0x24   :  { %211 = dma.done.wait [#allocation5], 512  }
  0x25   :  { %212 = vsyncadd [#allocation5], 4294966784  ;;  %v217_v0 = vmov 0.0|0.0   ;;  %vm218_vm0 = vmmov 0   ;;  %v219_v1 = vmov 0.0   ;;  %v41_v2 = vld [vmem:[#allocation4] sm:$0xff] }
  0x26   :  { %152 = vmatprep.subr.bf16.mxu0 %v217_v0  ;;  %149 = vmatprep.mubr.msk.f32.mxu0 %vm218_vm0, %v219_v1  ;;  %v42_v3 = vld [vmem:[#allocation4 + $0x8] sm:$0xff]  ;;  %v43_v4 = vld [vmem:[#allocation4 + $0x10] sm:$0xff]  ;;  %v44_v6 = vld [vmem:[#allocation4 + $0x18] sm:$0xff]  ;;  %vm52_vm1 = vcmask 261120   ;;  %vm126_vm2 = vcmask 15360  }
  0x27   :  { %v153_v5 = vpack.c.bf16 %v42_v3, %v41_v2  ;;  %v156_v7 = vpack.c.bf16 %v44_v6, %v43_v4  ;;  %v40_v8 = vld [vmem:[#allocation2] sm:$0xff]  ;;  %v134_v9 = vld [vmem:[%s279_s2] ss:$0 sm:$0xff] }
  0x29   :  { %154 = vmatpush3.bf16.msra.mxu0 %v153_v5 }
  0x2a   :  { %155 = vmatprep.subr.bf16.mxu0 %v217_v0 }
  0x2d   :  { %157 = vmatpush3.bf16.msra.mxu0 %v156_v7 }
  0x30   :  { %150 = vmatmul.mubr.msk.f32.vlgmr.msra.gmra.mrb[0].mxu0 %vm52_vm1, %v40_v8 }
 0x103   :  { %v122_v10 = vpop.f32.mrb[0].mxu0 }
 0x104   :  { %v123_v11 = vadd.f32 %v134_v9, %v122_v10  ;;  %v151_v12 = vpop.f32.mrb[1].mxu0 }
 0x106   :  { %127 = vst.msk [vmem:[%s280_s3] sm:$0xff] %vm126_vm2, %v123_v11 }
 0x107   :  { %132 = vsyncpa [#allocation3], 1 }
 0x108   :  { %133 = vsyncpa [#allocation5], 1 }

</bundles_post_ra>
